<compile_context>
chip_gen: v7x
topology: tpu7x:2x2x1
jax: 0.10.0
libtpu: 0.0.40
codegen_flags: <defaults>
</compile_context>

<pallas_src>
import functools

import jax
import jax.numpy as jnp
from jax.experimental import pallas as pl
from jax.experimental.pallas import tpu as pltpu


def _round_up(x, m):
    return ((x + m - 1) // m) * m


def qnetwork_kernel(x_ref, w1_ref, b1_ref, w2_ref, b2_ref, w3_ref, b3_ref, o_ref):
    # layer 1: Linear + ReLU (f32 accumulation on the MXU, f32 bias/activation)
    h = jnp.dot(x_ref[...], w1_ref[...], preferred_element_type=jnp.float32) + b1_ref[...]
    h = jnp.maximum(h, 0.0).astype(w2_ref.dtype)
    # layer 2: Linear + ReLU
    h = jnp.dot(h, w2_ref[...], preferred_element_type=jnp.float32) + b2_ref[...]
    h = jnp.maximum(h, 0.0).astype(w3_ref.dtype)
    # output layer: Linear (lane-dense padded width), no activation
    o_ref[...] = (jnp.dot(h, w3_ref[...], preferred_element_type=jnp.float32)
                  + b3_ref[...]).astype(o_ref.dtype)


@functools.partial(jax.jit, static_argnames=("block_rows", "compute_dtype"))
def qnetwork_forward(x, params, *, block_rows=512, compute_dtype=jnp.bfloat16):
    """x: (B, input_dim); params: dict of w1,b1,w2,b2,w3,b3 with weights stored (in, out).

    Equivalent to the PyTorch QNetwork forward: relu(x@W1+b1) -> relu(@W2+b2) -> @W3+b3.
    """
    w1, b1 = params["w1"], params["b1"]
    w2, b2 = params["w2"], params["b2"]
    w3, b3 = params["w3"], params["b3"]

    B, input_dim = x.shape
    out_dim = w3.shape[1]

    # --- lane-dense output: pad output features to a multiple of 128 (zero columns) ---
    out_pad = _round_up(max(out_dim, 128), 128)
    if out_pad != out_dim:
        w3p = jnp.zeros((w3.shape[0], out_pad), w3.dtype).at[:, :out_dim].set(w3)
        b3p = jnp.zeros((1, out_pad), b3.dtype).at[:, :out_dim].set(b3)
    else:
        w3p, b3p = w3, b3

    # --- batch tiling: tile rows (multiple of 8), pad B so every tile is full ---
    TB = min(block_rows, _round_up(B, 8))
    TB = _round_up(TB, 8)
    Bp = _round_up(B, TB)
    if Bp != B:
        xp = jnp.zeros((Bp, input_dim), x.dtype).at[:B].set(x)
    else:
        xp = x
    nb = Bp // TB

    # --- cast activations/weights to the compute dtype (bf16 halves HBM bytes for x) ---
    xp = xp.astype(compute_dtype)
    w1c = w1.astype(compute_dtype)
    w2c = w2.astype(compute_dtype)
    w3c = w3p.astype(compute_dtype)
    # biases stay f32 (added to the f32 accumulator)
    b1f = b1.astype(jnp.float32)
    b2f = b2.astype(jnp.float32)
    b3f = b3p.astype(jnp.float32)

    grid_spec = pltpu.PrefetchScalarGridSpec(
        num_scalar_prefetch=0,
        grid=(nb,),
        in_specs=[
            # batch-tiled activations
            pl.BlockSpec((TB, input_dim), lambda i: (i, 0)),
            # VMEM-resident weights/biases: block index does not vary with the grid
            pl.BlockSpec(w1c.shape, lambda i: (0, 0)),
            pl.BlockSpec(b1f.shape, lambda i: (0, 0)),
            pl.BlockSpec(w2c.shape, lambda i: (0, 0)),
            pl.BlockSpec(b2f.shape, lambda i: (0, 0)),
            pl.BlockSpec(w3c.shape, lambda i: (0, 0)),
            pl.BlockSpec(b3f.shape, lambda i: (0, 0)),
        ],
        out_specs=pl.BlockSpec((TB, out_pad), lambda i: (i, 0)),
    )

    out_padded = pl.pallas_call(
        qnetwork_kernel,
        out_shape=jax.ShapeDtypeStruct((Bp, out_pad), jnp.float32),
        grid_spec=grid_spec,
        compiler_params=pltpu.CompilerParams(
            dimension_semantics=("parallel",),     # megacore sharding on v7x
            vmem_limit_bytes=64 * 1024 * 1024,     # comfortably within v7x's 64 MiB VMEM
        ),
    )(xp, w1c, b1f, w2c, b2f, w3c, b3f)

    return out_padded[:B, :out_dim]


def init_qnetwork_params(key, input_dim, output_dim, hidden_units=(64, 64)):
    """Deterministic init mimicking PyTorch nn.Linear default U(-1/sqrt(fan_in), +)."""
    params = {}
    dims = [input_dim] + list(hidden_units) + [output_dim]
    for i in range(len(dims) - 1):
        fan_in, fan_out = dims[i], dims[i + 1]
        key, kw, kb = jax.random.split(key, 3)
        bound = 1.0 / jnp.sqrt(jnp.float32(fan_in))
        # stored as (in, out) so the kernel computes x @ W  (== x @ W_torch.T)
        params[f"w{i+1}"] = jax.random.uniform(
            kw, (fan_in, fan_out), jnp.float32, minval=-bound, maxval=bound)
        params[f"b{i+1}"] = jax.random.uniform(
            kb, (1, fan_out), jnp.float32, minval=-bound, maxval=bound)
    return params


def qnetwork_reference(x, params):
    """Pure-JAX f32 reference for correctness checking."""
    h = jnp.maximum(x @ params["w1"] + params["b1"], 0.0)
    h = jnp.maximum(h @ params["w2"] + params["b2"], 0.0)
    return h @ params["w3"] + params["b3"]


if __name__ == "__main__":
    key = jax.random.PRNGKey(0)
    k_params, k_x1, k_x2 = jax.random.split(key, 3)

    input_dim = 16       # state-space dimension
    output_dim = 4       # action-space dimension
    hidden_units = (64, 64)

    params = init_qnetwork_params(k_params, input_dim, output_dim, hidden_units)

    # --- small demo batch (B=8), full-precision path: tight tolerance ---
    x_small = jax.random.normal(k_x1, (8, input_dim), jnp.float32)
    q_f32 = qnetwork_forward(x_small, params, compute_dtype=jnp.float32)
    q_f32 = jax.block_until_ready(q_f32)
    ref_small = qnetwork_reference(x_small, params)
    assert q_f32.shape == (8, output_dim)
    assert jnp.allclose(q_f32, ref_small, atol=1e-4, rtol=1e-4), "f32 mismatch vs reference"

    # --- larger, non-multiple-of-8 batch, bf16 fast path: exercises tiling + row padding ---
    x_big = jax.random.normal(k_x2, (100, input_dim), jnp.float32)
    q_bf16 = qnetwork_forward(x_big, params, compute_dtype=jnp.bfloat16)
    q_bf16 = jax.block_until_ready(q_bf16)
    ref_big = qnetwork_reference(x_big, params)
    assert q_bf16.shape == (100, output_dim)
    # bf16 inputs lose mantissa bits -> loosened tolerance
    assert jnp.allclose(q_bf16, ref_big, atol=2e-2, rtol=2e-2), "bf16 mismatch vs reference"

    print("KERNEL_OK")
</pallas_src>

<mosaic_0001>
module attributes {stable_mosaic.version = 11 : i64} {
  func.func @qnetwork_kernel(%arg0: i32, %arg1: memref<8x16xf32, #tpu.memory_space<vmem>>, %arg2: memref<16x64xf32, #tpu.memory_space<vmem>>, %arg3: memref<1x64xf32, #tpu.memory_space<vmem>>, %arg4: memref<64x64xf32, #tpu.memory_space<vmem>>, %arg5: memref<1x64xf32, #tpu.memory_space<vmem>>, %arg6: memref<64x128xf32, #tpu.memory_space<vmem>>, %arg7: memref<1x128xf32, #tpu.memory_space<vmem>>, %arg8: memref<8x128xf32, #tpu.memory_space<vmem>>) attributes {dimension_semantics = [#tpu.dimension_semantics<parallel>], iteration_bounds = array<i64: 1>, scalar_prefetch = 0 : i64, scratch_operands = 0 : i64, tpu.core_type = #tpu.core_type<tc>, window_params = [{transform_indices = @transform_0, window_bounds = array<i64: 8, 16>}, {pipeline_mode = #tpu.pipeline_mode<synchronous>, transform_indices = @transform_1, window_bounds = array<i64: 16, 64>}, {pipeline_mode = #tpu.pipeline_mode<synchronous>, transform_indices = @transform_2, window_bounds = array<i64: 1, 64>}, {pipeline_mode = #tpu.pipeline_mode<synchronous>, transform_indices = @transform_3, window_bounds = array<i64: 64, 64>}, {pipeline_mode = #tpu.pipeline_mode<synchronous>, transform_indices = @transform_4, window_bounds = array<i64: 1, 64>}, {pipeline_mode = #tpu.pipeline_mode<synchronous>, transform_indices = @transform_5, window_bounds = array<i64: 64, 128>}, {pipeline_mode = #tpu.pipeline_mode<synchronous>, transform_indices = @transform_6, window_bounds = array<i64: 1, 128>}, {transform_indices = @transform_7, window_bounds = array<i64: 8, 128>}]} {
    %c0 = arith.constant 0 : index
    %c0_0 = arith.constant 0 : index
    %0 = vector.load %arg1[%c0, %c0_0] : memref<8x16xf32, #tpu.memory_space<vmem>>, vector<8x16xf32>
    %c0_1 = arith.constant 0 : index
    %c0_2 = arith.constant 0 : index
    %1 = vector.load %arg2[%c0_1, %c0_2] : memref<16x64xf32, #tpu.memory_space<vmem>>, vector<16x64xf32>
    %cst = arith.constant dense<0.000000e+00> : vector<8x64xf32>
    %2 = tpu.matmul %0, %1, %cst {dimension_numbers = #tpu.dot_dimension_numbers<[1], [0], [0], [1], [0, 0, 1, 1], [], []>} : vector<8x16xf32>, vector<16x64xf32>, vector<8x64xf32> -> vector<8x64xf32>
    %c0_3 = arith.constant 0 : index
    %c0_4 = arith.constant 0 : index
    %3 = vector.load %arg3[%c0_3, %c0_4] : memref<1x64xf32, #tpu.memory_space<vmem>>, vector<1x64xf32>
    %4 = vector.broadcast %3 : vector<1x64xf32> to vector<8x64xf32>
    %5 = arith.addf %2, %4 : vector<8x64xf32>
    %cst_5 = arith.constant 0.000000e+00 : f32
    %6 = vector.broadcast %cst_5 : f32 to vector<8x64xf32>
    %7 = arith.maximumf %5, %6 : vector<8x64xf32>
    %c0_6 = arith.constant 0 : index
    %c0_7 = arith.constant 0 : index
    %8 = vector.load %arg4[%c0_6, %c0_7] : memref<64x64xf32, #tpu.memory_space<vmem>>, vector<64x64xf32>
    %cst_8 = arith.constant dense<0.000000e+00> : vector<8x64xf32>
    %9 = tpu.matmul %7, %8, %cst_8 {dimension_numbers = #tpu.dot_dimension_numbers<[1], [0], [0], [1], [0, 0, 1, 1], [], []>} : vector<8x64xf32>, vector<64x64xf32>, vector<8x64xf32> -> vector<8x64xf32>
    %c0_9 = arith.constant 0 : index
    %c0_10 = arith.constant 0 : index
    %10 = vector.load %arg5[%c0_9, %c0_10] : memref<1x64xf32, #tpu.memory_space<vmem>>, vector<1x64xf32>
    %11 = vector.broadcast %10 : vector<1x64xf32> to vector<8x64xf32>
    %12 = arith.addf %9, %11 : vector<8x64xf32>
    %cst_11 = arith.constant 0.000000e+00 : f32
    %13 = vector.broadcast %cst_11 : f32 to vector<8x64xf32>
    %14 = arith.maximumf %12, %13 : vector<8x64xf32>
    %c0_12 = arith.constant 0 : index
    %c0_13 = arith.constant 0 : index
    %15 = vector.load %arg6[%c0_12, %c0_13] : memref<64x128xf32, #tpu.memory_space<vmem>>, vector<64x128xf32>
    %cst_14 = arith.constant dense<0.000000e+00> : vector<8x128xf32>
    %16 = tpu.matmul %14, %15, %cst_14 {dimension_numbers = #tpu.dot_dimension_numbers<[1], [0], [0], [1], [0, 0, 1, 1], [], []>} : vector<8x64xf32>, vector<64x128xf32>, vector<8x128xf32> -> vector<8x128xf32>
    %c0_15 = arith.constant 0 : index
    %c0_16 = arith.constant 0 : index
    %17 = vector.load %arg7[%c0_15, %c0_16] : memref<1x128xf32, #tpu.memory_space<vmem>>, vector<1x128xf32>
    %18 = vector.broadcast %17 : vector<1x128xf32> to vector<8x128xf32>
    %19 = arith.addf %16, %18 : vector<8x128xf32>
    %c0_17 = arith.constant 0 : index
    %c0_18 = arith.constant 0 : index
    %20 = vector.load %arg8[%c0_17, %c0_18] : memref<8x128xf32, #tpu.memory_space<vmem>>, vector<8x128xf32>
    tpu.vector_store %arg8[%c0_17, %c0_18], %19 {strides = array<i32>} : memref<8x128xf32, #tpu.memory_space<vmem>>, vector<8x128xf32>,
    return
  }
  func.func @transform_0(%arg0: i32) -> (i32, i32) {
    %c0_i32 = arith.constant 0 : i32
    %c0_i32_0 = arith.constant 0 : i32
    return %arg0, %c0_i32 : i32, i32
  }
  func.func @transform_1(%arg0: i32) -> (i32, i32) {
    %c0_i32 = arith.constant 0 : i32
    %c0_i32_0 = arith.constant 0 : i32
    %c0_i32_1 = arith.constant 0 : i32
    return %c0_i32, %c0_i32_0 : i32, i32
  }
  func.func @transform_2(%arg0: i32) -> (i32, i32) {
    %c0_i32 = arith.constant 0 : i32
    %c0_i32_0 = arith.constant 0 : i32
    %c0_i32_1 = arith.constant 0 : i32
    return %c0_i32, %c0_i32_0 : i32, i32
  }
  func.func @transform_3(%arg0: i32) -> (i32, i32) {
    %c0_i32 = arith.constant 0 : i32
    %c0_i32_0 = arith.constant 0 : i32
    %c0_i32_1 = arith.constant 0 : i32
    return %c0_i32, %c0_i32_0 : i32, i32
  }
  func.func @transform_4(%arg0: i32) -> (i32, i32) {
    %c0_i32 = arith.constant 0 : i32
    %c0_i32_0 = arith.constant 0 : i32
    %c0_i32_1 = arith.constant 0 : i32
    return %c0_i32, %c0_i32_0 : i32, i32
  }
  func.func @transform_5(%arg0: i32) -> (i32, i32) {
    %c0_i32 = arith.constant 0 : i32
    %c0_i32_0 = arith.constant 0 : i32
    %c0_i32_1 = arith.constant 0 : i32
    return %c0_i32, %c0_i32_0 : i32, i32
  }
  func.func @transform_6(%arg0: i32) -> (i32, i32) {
    %c0_i32 = arith.constant 0 : i32
    %c0_i32_0 = arith.constant 0 : i32
    %c0_i32_1 = arith.constant 0 : i32
    return %c0_i32, %c0_i32_0 : i32, i32
  }
  func.func @transform_7(%arg0: i32) -> (i32, i32) {
    %c0_i32 = arith.constant 0 : i32
    %c0_i32_0 = arith.constant 0 : i32
    return %arg0, %c0_i32 : i32, i32
  }
}

</mosaic_0001>

<bundles_post_ra>
// kernel: qnetwork_forward.1
= control target key start
LH: loop header
LB: loop body
LE: loop exit
PB: predicated region body
PF: predicated region fallthrough
CT: control target
= control target key end

     0   :  { %12 = vsyncpa [#allocation3], 0  ;;  %s855_s0 = inlined_call_operand.hbm [shape: f32[8,16], index: 0, kind: input, shape index: {}]   ;;  %s856_s1 = inlined_call_operand.hbm [shape: f32[16,64], index: 1, kind: input, shape index: {}]   ;;  %s857_s2 = inlined_call_operand.hbm [shape: f32[1,64], index: 2, kind: input, shape index: {}]   ;;  %s858_s3 = inlined_call_operand.hbm [shape: f32[64,64], index: 3, kind: input, shape index: {}]   ;;  %s859_s4 = inlined_call_operand.hbm [shape: f32[1,64], index: 4, kind: input, shape index: {}]   ;;  %s860_s5 = inlined_call_operand.hbm [shape: f32[64,128], index: 5, kind: input, shape index: {}]   ;;  %s861_s6 = inlined_call_operand.hbm [shape: f32[1,128], index: 6, kind: input, shape index: {}]   ;;  %s862_s7 = inlined_call_operand.hbm [shape: f32[8,128], index: 7, kind: output, shape index: {}]  }
   0x1   :  { %13 = vsyncpa [#allocation6], 0 }
   0x2   :  { %14 = vsyncpa [#allocation9], 0 }
   0x3   :  { %15 = vsyncpa [#allocation12], 0 }
   0x4   :  { %16 = vsyncpa [#allocation4], 0  ;;  %s694_s24 = smov [#allocation5]   ;;  %s508_s28 = scalar_lea.hbm %s856_s1, 256 }
   0x5   :  { %s32_s25 = sshll.u32 %s694_s24, 4  ;;  %p509_p0 = scmp.ne.s32.totalorder %s856_s1, %s508_s28  ;;  %s33_s25 = int_to_ptr.vmem [resolvable:$true] %s32_s25 }
   0x6   :  { %p512_p1 = scmp.lt.u32.totalorder %s508_s28, %s856_s1 }
   0x8   :  { %p514_p2 = pnand %p512_p1, %p509_p0 }
   0xa   :  { %517 = shalt.err (!%p514_p2)
}
   0xb   :  { %s518_s10 = scalar_lea.vmem %s33_s25, 256  ;;  %p523_p4 = scmp.lt.s32.totalorder %s33_s25, %s33_s25 }
   0xc   :  { %p519_p3 = scmp.ne.s32.totalorder %s33_s25, %s518_s10  ;;  %p524_p5 = scmp.lt.s32.totalorder %s518_s10, %s518_s10 }
   0xe   :  { %p525_p6 = por %p524_p5, %p523_p4 }
  0x10   :  { %p526_p7 = pnand %p525_p6, %p519_p3 }
  0x12   :  { %529 = shalt.err (!%p526_p7)
}
  0x13   :  { %s695_s11 = smov 128   ;;  %s696_s12 = smov 8  }
  0x14   :  { %38 = dma.hbm_to_vmem [thread:$0]  %s856_s1, 256, %s33_s25, [#allocation6], %s695_s11, %s695_s11, %s696_s12  }
  0x15   :  { %s697_s15 = smov [#allocation8]   ;;  %s698_s17 = smov [#allocation11]  }
  0x16   :  { %s54_s16 = sshll.u32 %s697_s15, 4  ;;  %s76_s18 = sshll.u32 %s698_s17, 4  ;;  %s55_s16 = int_to_ptr.vmem [resolvable:$true] %s54_s16  ;;  %s77_s18 = int_to_ptr.vmem [resolvable:$true] %s76_s18 }
  0x17   :  { %s530_s21 = scalar_lea.hbm %s858_s3, 1024 }
  0x18   :  { %p531_p8 = scmp.ne.s32.totalorder %s858_s3, %s530_s21  ;;  %p534_p9 = scmp.lt.u32.totalorder %s530_s21, %s858_s3 }
  0x1a   :  { %p536_p10 = pnand %p534_p9, %p531_p8 }
  0x1c   :  { %539 = shalt.err (!%p536_p10)
}
  0x1d   :  { %s540_s1 = scalar_lea.vmem %s55_s16, 1024  ;;  %p545_p12 = scmp.lt.s32.totalorder %s55_s16, %s55_s16 }
  0x1e   :  { %p541_p11 = scmp.ne.s32.totalorder %s55_s16, %s540_s1  ;;  %p546_p13 = scmp.lt.s32.totalorder %s540_s1, %s540_s1 }
  0x20   :  { %p547_p0 = por %p546_p13, %p545_p12 }
  0x22   :  { %p548_p1 = pnand %p547_p0, %p541_p11 }
  0x24   :  { %551 = shalt.err (!%p548_p1)
}
  0x25   :  { %60 = dma.hbm_to_vmem [thread:$0]  %s858_s3, 1024, %s55_s16, [#allocation9], %s695_s11, %s695_s11, %s696_s12  }
  0x26   :  { %s552_s30 = scalar_lea.hbm %s860_s5, 1024 }
  0x27   :  { %p553_p2 = scmp.ne.s32.totalorder %s860_s5, %s552_s30  ;;  %p556_p3 = scmp.lt.u32.totalorder %s552_s30, %s860_s5 }
  0x29   :  { %p558_p4 = pnand %p556_p3, %p553_p2 }
  0x2b   :  { %561 = shalt.err (!%p558_p4)
}
  0x2c   :  { %s562_s14 = scalar_lea.vmem %s77_s18, 1024  ;;  %p567_p6 = scmp.lt.s32.totalorder %s77_s18, %s77_s18 }
  0x2d   :  { %p563_p5 = scmp.ne.s32.totalorder %s77_s18, %s562_s14  ;;  %p568_p7 = scmp.lt.s32.totalorder %s562_s14, %s562_s14 }
  0x2f   :  { %p569_p8 = por %p568_p7, %p567_p6 }
  0x31   :  { %p570_p9 = pnand %p569_p8, %p563_p5 }
  0x33   :  { %573 = shalt.err (!%p570_p9)
}
  0x34   :  { %82 = dma.hbm_to_vmem [thread:$0]  %s860_s5, 1024, %s77_s18, [#allocation12], %s695_s11, %s695_s11, %s696_s12  }
  0x35   :  { %s699_s16 = smov [#allocation2]   ;;  %s700_s19 = smov [#allocation7]  }
  0x36   :  { %s23_s17 = sshll.u32 %s699_s16, 4  ;;  %s45_s20 = sshll.u32 %s700_s19, 4  ;;  %s24_s17 = int_to_ptr.vmem [resolvable:$true] %s23_s17  ;;  %s46_s20 = int_to_ptr.vmem [resolvable:$true] %s45_s20 }
  0x37   :  { %s574_s23 = scalar_lea.hbm %s855_s0, 128 }
  0x38   :  { %p575_p10 = scmp.ne.s32.totalorder %s855_s0, %s574_s23  ;;  %p578_p11 = scmp.lt.u32.totalorder %s574_s23, %s855_s0 }
  0x3a   :  { %p580_p12 = pnand %p578_p11, %p575_p10 }
  0x3c   :  { %583 = shalt.err (!%p580_p12)
}
  0x3d   :  { %s584_s5 = scalar_lea.vmem %s24_s17, 128  ;;  %p589_p0 = scmp.lt.s32.totalorder %s24_s17, %s24_s17 }
  0x3e   :  { %p585_p13 = scmp.ne.s32.totalorder %s24_s17, %s584_s5  ;;  %p590_p1 = scmp.lt.s32.totalorder %s584_s5, %s584_s5 }
  0x40   :  { %p591_p2 = por %p590_p1, %p589_p0 }
  0x42   :  { %p592_p3 = pnand %p591_p2, %p585_p13 }
  0x44   :  { %595 = shalt.err (!%p592_p3)
}
  0x45   :  { %26 = dma.hbm_to_vmem [thread:$0]  %s855_s0, 128, %s24_s17, [#allocation3]  }
  0x46   :  { %s596_s28 = scalar_lea.hbm %s857_s2, 16 }
  0x47   :  { %p597_p4 = scmp.ne.s32.totalorder %s857_s2, %s596_s28  ;;  %p600_p5 = scmp.lt.u32.totalorder %s596_s28, %s857_s2 }
  0x49   :  { %p602_p6 = pnand %p600_p5, %p597_p4 }
  0x4b   :  { %605 = shalt.err (!%p602_p6)
}
  0x4c   :  { %s606_s10 = scalar_lea.vmem %s46_s20, 16  ;;  %s610_s13 = scalar_lea.vmem %s46_s20, 32 }
  0x4d   :  { %p607_p7 = scmp.ne.s32.totalorder %s46_s20, %s606_s10  ;;  %p611_p8 = scmp.lt.s32.totalorder %s46_s20, %s46_s20 }
  0x4e   :  { %p612_p9 = scmp.lt.s32.totalorder %s610_s13, %s606_s10 }
  0x50   :  { %p613_p10 = por %p612_p9, %p611_p8 }
  0x52   :  { %p614_p11 = pnand %p613_p10, %p607_p7 }
  0x54   :  { %617 = shalt.err (!%p614_p11)
}
  0x55   :  { %48 = dma.hbm_to_vmem [thread:$0]  %s857_s2, 16, %s46_s20, [#allocation6]  }
  0x56   :  { %s701_s3 = smov [#allocation10]   ;;  %s702_s16 = smov [#allocation13]  }
  0x57   :  { %s67_s15 = sshll.u32 %s701_s3, 4  ;;  %s89_s17 = sshll.u32 %s702_s16, 4  ;;  %s68_s15 = int_to_ptr.vmem [resolvable:$true] %s67_s15  ;;  %s90_s17 = int_to_ptr.vmem [resolvable:$true] %s89_s17 }
  0x58   :  { %s618_s22 = scalar_lea.hbm %s859_s4, 16 }
  0x59   :  { %p619_p12 = scmp.ne.s32.totalorder %s859_s4, %s618_s22  ;;  %p622_p13 = scmp.lt.u32.totalorder %s618_s22, %s859_s4 }
  0x5b   :  { %p624_p0 = pnand %p622_p13, %p619_p12 }
  0x5d   :  { %627 = shalt.err (!%p624_p0)
}
  0x5e   :  { %s628_s2 = scalar_lea.vmem %s68_s15, 16  ;;  %s632_s20 = scalar_lea.vmem %s68_s15, 32 }
  0x5f   :  { %p629_p1 = scmp.ne.s32.totalorder %s68_s15, %s628_s2  ;;  %p633_p2 = scmp.lt.s32.totalorder %s68_s15, %s68_s15 }
  0x60   :  { %p634_p3 = scmp.lt.s32.totalorder %s632_s20, %s628_s2 }
  0x62   :  { %p635_p4 = por %p634_p3, %p633_p2 }
  0x64   :  { %p636_p5 = pnand %p635_p4, %p629_p1 }
  0x66   :  { %639 = shalt.err (!%p636_p5)
}
  0x67   :  { %70 = dma.hbm_to_vmem [thread:$0]  %s859_s4, 16, %s68_s15, [#allocation9]  }
  0x68   :  { %s640_s18 = scalar_lea.hbm %s861_s6, 16 }
  0x69   :  { %p641_p6 = scmp.ne.s32.totalorder %s861_s6, %s640_s18  ;;  %p644_p7 = scmp.lt.u32.totalorder %s640_s18, %s861_s6 }
  0x6b   :  { %p646_p8 = pnand %p644_p7, %p641_p6 }
  0x6d   :  { %649 = shalt.err (!%p646_p8)
}
  0x6e   :  { %s650_s8 = scalar_lea.vmem %s90_s17, 16  ;;  %s654_s9 = scalar_lea.vmem %s90_s17, 32 }
  0x6f   :  { %p651_p9 = scmp.ne.s32.totalorder %s90_s17, %s650_s8  ;;  %p655_p10 = scmp.lt.s32.totalorder %s90_s17, %s90_s17 }
  0x70   :  { %p656_p11 = scmp.lt.s32.totalorder %s654_s9, %s650_s8 }
  0x72   :  { %p657_p12 = por %p656_p11, %p655_p10 }
  0x74   :  { %p658_p13 = pnand %p657_p12, %p651_p9 }
  0x76   :  { %661 = shalt.err (!%p658_p13)
}
  0x77   :  { %92 = dma.hbm_to_vmem [thread:$0]  %s861_s6, 16, %s90_s17, [#allocation12]  }
  0x78   :  { %684 = dma.done.wait [#allocation3], 128  }
  0x79   :  { %685 = vsyncadd [#allocation3], 4294967168 }
  0x7a   :  { %686 = dma.done.wait [#allocation6], 272  }
  0x7b   :  { %687 = vsyncadd [#allocation6], 4294967024 }
  0x7c   :  { %688 = dma.done.wait [#allocation9], 1040  }
  0x7d   :  { %689 = vsyncadd [#allocation9], 4294966256 }
  0x7e   :  { %690 = dma.done.wait [#allocation12], 1040  }
  0x7f   :  { %691 = vsyncadd [#allocation12], 4294966256  ;;  %v703_v0 = vmov 0.0|0.0   ;;  %vm704_vm0 = vmmov 0   ;;  %v705_v1 = vmov 0.0   ;;  %v115_v2 = vld [vmem:[#allocation5] sm:$0xff] }
  0x80   :  { %468 = vmatprep.subr.bf16.mxu0 %v703_v0  ;;  %427 = vmatprep.mubr.msk.f32.mxu0 %vm704_vm0, %v705_v1  ;;  %v116_v3 = vld [vmem:[#allocation5 + $0x8] sm:$0xff]  ;;  %v199_v5 = vld [vmem:[#allocation8] sm:$0xff]  ;;  %v200_v6 = vld [vmem:[#allocation8 + $0x8] sm:$0xff]  ;;  %vm124_vm1 = vcmask 130048   ;;  %vm214_vm2 = vcmask 523264   ;;  %s706_s6 = smov [#allocation14]  }
  0x81   :  { %471 = vmatprep.subr.bf16.mxu1 %v703_v0  ;;  %446 = vmatprep.mubr.msk.f32.mxu1 %vm704_vm0, %v705_v1  ;;  %v469_v4 = vpack.c.bf16 %v116_v3, %v115_v2  ;;  %v201_v7 = vld [vmem:[#allocation8 + $0x10] sm:$0xff]  ;;  %v472_v8 = vpack.c.bf16 %v200_v6, %v199_v5  ;;  %v202_v9 = vld [vmem:[#allocation8 + $0x18] sm:$0xff]  ;;  %v114_v10 = vld [vmem:[#allocation2] sm:$0xff]  ;;  %s384_s13 = sshll.u32 %s706_s6, 4  ;;  %s385_s13 = int_to_ptr.vmem [resolvable:$true] %s384_s13 }
  0x82   :  { %v475_v11 = vpack.c.bf16 %v202_v9, %v201_v7  ;;  %v203_v12 = vld [vmem:[#allocation8 + $0x20] sm:$0xff]  ;;  %v204_v13 = vld [vmem:[#allocation8 + $0x28] sm:$0xff]  ;;  %v205_v15 = vld [vmem:[#allocation8 + $0x30] sm:$0xff]  ;;  %s662_s0 = scalar_lea.vmem %s385_s13, 128  ;;  %p667_p1 = scmp.lt.s32.totalorder %s385_s13, %s385_s13 }
  0x83   :  { %470 = vmatpush3.bf16.msra.mxu0 %v469_v4  ;;  %473 = vmatpush3.bf16.msra.mxu1 %v472_v8  ;;  %v478_v14 = vpack.c.bf16 %v204_v13, %v203_v12  ;;  %v206_v16 = vld [vmem:[#allocation8 + $0x38] sm:$0xff]  ;;  %v289_v18 = vld [vmem:[#allocation11] sm:$0xff]  ;;  %v290_v19 = vld [vmem:[#allocation11 + $0x8] sm:$0xff]  ;;  %p663_p0 = scmp.ne.s32.totalorder %s385_s13, %s662_s0  ;;  %p668_p2 = scmp.lt.s32.totalorder %s662_s0, %s662_s0 }
  0x84   :  { %483 = vmatprep.subr.bf16.mxu0 %v703_v0  ;;  %474 = vmatprep.subr.bf16.mxu1 %v703_v0  ;;  %v481_v17 = vpack.c.bf16 %v206_v16, %v205_v15  ;;  %v291_v20 = vld [vmem:[#allocation11 + $0x10] sm:$0xff]  ;;  %v484_v21 = vpack.c.bf16 %v290_v19, %v289_v18  ;;  %v292_v22 = vld [vmem:[#allocation11 + $0x18] sm:$0xff]  ;;  %v293_v24 = vld [vmem:[#allocation11 + $0x20] sm:$0xff] }
  0x85   :  { %v487_v23 = vpack.c.bf16 %v292_v22, %v291_v20  ;;  %v294_v25 = vld [vmem:[#allocation11 + $0x28] sm:$0xff]  ;;  %v396_v27 = vld [vmem:[#allocation7] ss:$0 sm:$0xff]  ;;  %v295_v32 = vld [vmem:[#allocation11 + $0x30] sm:$0xff]  ;;  %p669_p3 = por %p668_p2, %p667_p1 }
  0x86   :  { %428 = vmatmul.mubr.msk.f32.vlgmr.msra.gmra.mrb[0].mxu0 %vm124_vm1, %v114_v10  ;;  %v490_v26 = vpack.c.bf16 %v294_v25, %v293_v24  ;;  %v296_v33 = vld [vmem:[#allocation11 + $0x38] sm:$0xff]  ;;  %v400_v40 = vld [vmem:[#allocation13] ss:$0 sm:$0xff] }
  0x87   :  { %465 = vmatprep.mubr.msk.f32.mxu0 %vm704_vm0, %v705_v1  ;;  %476 = vmatpush3.bf16.msra.mxu1 %v475_v11  ;;  %v493_v34 = vpack.c.bf16 %v296_v33, %v295_v32  ;;  %v398_v35 = vld [vmem:[#allocation10] ss:$0 sm:$0xff]  ;;  %p670_p4 = pnand %p669_p3, %p663_p0 }
  0x88   :  { %477 = vmatprep.subr.bf16.mxu1 %v703_v0  ;;  %485 = vmatpush3.bf16.msra.mxu0 %v484_v21 }
  0x89   :  { %486 = vmatprep.subr.bf16.mxu0 %v703_v0 }
  0x8b   :  { %479 = vmatpush3.bf16.msra.mxu1 %v478_v14 }
  0x8c   :  { %480 = vmatprep.subr.bf16.mxu1 %v703_v0  ;;  %488 = vmatpush3.bf16.msra.mxu0 %v487_v23 }
  0x8d   :  { %489 = vmatprep.subr.bf16.mxu0 %v703_v0 }
  0x8f   :  { %482 = vmatpush3.bf16.msra.mxu1 %v481_v17 }
  0x90   :  { %491 = vmatpush3.bf16.msra.mxu0 %v490_v26 }
  0x91   :  { %492 = vmatprep.subr.bf16.mxu0 %v703_v0 }
  0x94   :  { %494 = vmatpush3.bf16.msra.mxu0 %v493_v34 }
 0x159   :  { %v194_v28 = vpop.f32.mrb[0].mxu0 }
 0x15a   :  { %v195_v29 = vadd.f32 %v396_v27, %v194_v28  ;;  %v429_v30 = vpop.f32.mrb[1].mxu0 }
 0x15c   :  { %v198_v31 = vmax.f32 %v195_v29, 0.0 }
 0x15e   :  { %447 = vmatmul.mubr.msk.f32.vlgmr.msra.gmra.mrb[0].mxu1 %vm214_vm2, %v198_v31 }
 0x231   :  { %v284_v36 = vpop.f32.mrb[0].mxu1 }
 0x232   :  { %v285_v37 = vadd.f32 %v398_v35, %v284_v36  ;;  %v448_v38 = vpop.f32.mrb[1].mxu1 }
 0x234   :  { %v288_v39 = vmax.f32 %v285_v37, 0.0 }
 0x236   :  { %466 = vmatmul.mubr.msk.f32.vlgmr.msra.gmra.mrb[2].mxu0 %vm214_vm2, %v288_v39 }
 0x309   :  { %v373_v41 = vpop.f32.mrb[2].mxu0 }
 0x30a   :  { %v374_v42 = vadd.f32 %v400_v40, %v373_v41  ;;  %v467_v43 = vpop.f32.mrb[3].mxu0 }
 0x30c   :  { %377 = vst [vmem:[#allocation14] sm:$0xff] %v374_v42 }
 0x30d   :  { %673 = shalt.err (!%p670_p4)
}
 0x30e   :  { %s674_s15 = scalar_lea.hbm %s862_s7, 128 }
 0x30f   :  { %p675_p5 = scmp.ne.s32.totalorder %s862_s7, %s674_s15  ;;  %p678_p6 = scmp.lt.u32.totalorder %s674_s15, %s862_s7 }
 0x311   :  { %p680_p7 = pnand %p678_p6, %p675_p5 }
 0x313   :  { %683 = shalt.err (!%p680_p7)
}
 0x314   :  { %387 = dma.vmem_to_hbm [thread:$0]  %s385_s13, 128, %s862_s7, [#allocation4]  }
 0x315   :  { %692 = dma.done.wait [#allocation4], 128  }
 0x316   :  { %693 = vsyncadd [#allocation4], 4294967168 }
 0x317   :  { %391 = vsyncpa [#allocation3], 1 }
 0x318   :  { %392 = vsyncpa [#allocation6], 1 }
 0x319   :  { %393 = vsyncpa [#allocation9], 1 }
 0x31a   :  { %394 = vsyncpa [#allocation12], 1 }
 0x31b   :  { %395 = vsyncpa [#allocation4], 1 }

</bundles_post_ra>
